<compile_context>
chip_gen: v7x
topology: tpu7x:2x2x1
jax: 0.10.0
libtpu: 0.0.40
codegen_flags: <defaults>
</compile_context>

<pallas_src>
import functools

import jax
import jax.numpy as jnp
from jax import lax
from jax.experimental import pallas as pl
from jax.experimental.pallas import tpu as pltpu

QK_DIM = 32
EPS_NORM = 1e-12
EPS_BN = 1e-5


def _vmem_budget_bytes():
    """Generation-aware VMEM budget (~75% of capacity, capped at 100 MiB)."""
    cap = 64 * 1024 * 1024          # conservative fallback (v7x-sized)
    try:
        cap = int(pltpu.get_tpu_info().vmem_capacity_bytes)
    except Exception:
        pass
    return min((cap * 3) // 4, 100 * 1024 * 1024)


def _l2_normalize_cols(a):
    # a: (D, T) f32 -- per-pixel (per lane/column) L2 norm over the D feature
    # rows, matching F.normalize(..., p=2, eps=1e-12).  rsqrt -> EUP slot.
    ss = jnp.sum(a * a, axis=0, keepdims=True)                       # (1, T)
    return a * lax.rsqrt(jnp.maximum(ss, EPS_NORM * EPS_NORM))


# ---------------------------------------------------------------------------
# Two-pass kernels (tiled over HW; VMEM bounded by one HW tile)
# ---------------------------------------------------------------------------
def fa_pass1_kernel(x_ref, wkv_ref, bkv_ref, f_ref, *,
                    tile_hw, tiles_per_split, hw_valid, hw_pad):
    """Accumulate a partial f = relu(V) @ normalize(K)^T over this split's HW
    tiles.  f_ref: (C, 32), resident across the (arbitrary) tile axis."""
    @pl.when(pl.program_id(2) == 0)
    def _():
        f_ref[...] = jnp.zeros_like(f_ref)

    x = x_ref[...].astype(jnp.bfloat16)                              # (C, T)
    # Fused K|V projection (single matmul against the x tile), f32 accumulate.
    kv = jnp.dot(wkv_ref[...], x,
                 preferred_element_type=jnp.float32) + bkv_ref[...]  # (32+C, T)
    kn = _l2_normalize_cols(kv[:QK_DIM])                             # (32, T)
    vr = jnp.maximum(kv[QK_DIM:], 0.0)                               # (C, T)
    if hw_valid < hw_pad:
        # Static branch: HW was zero-padded up to a lane multiple -- padded
        # columns would otherwise contribute relu(bv)*normalize(bk)^T to f.
        base = (pl.program_id(1) * tiles_per_split + pl.program_id(2)) * tile_hw
        col = base + lax.broadcasted_iota(jnp.int32, (1, tile_hw), 1)
        vr = jnp.where(col < hw_valid, vr, 0.0)
    # f += vr @ kn^T : contract over the lane (HW) axis -> (C, 32)
    # TODO(synk): check lower_as_mlir for a per-tile XLU transpose of kn; XLU
    # is normally a free slot here, restructure only if it binds.
    f_ref[...] += lax.dot_general(
        vr.astype(jnp.bfloat16), kn.astype(jnp.bfloat16),
        (((1,), (1,)), ((), ())), preferred_element_type=jnp.float32)


def fa_pass2_kernel(x_ref, g_ref, wqv_ref, bqv_ref, bo_ref, o_ref):
    """Per HW tile: w = g @ normalize(Q) + bo; out = relu(w) + V0.
    g = Wo @ f was folded in the wrapper, so the (C,C)@(C,T) matmul is gone."""
    x = x_ref[...].astype(jnp.bfloat16)                              # (C, T)
    # Fused Q|V projection; V0 (pre-relu) is needed for the residual.
    qv = jnp.dot(wqv_ref[...], x,
                 preferred_element_type=jnp.float32) + bqv_ref[...]  # (32+C, T)
    qn = _l2_normalize_cols(qv[:QK_DIM])                             # (32, T)
    v0 = qv[QK_DIM:]                                                 # (C, T) f32
    w = jnp.dot(g_ref[...].astype(jnp.bfloat16), qn.astype(jnp.bfloat16),
                preferred_element_type=jnp.float32) + bo_ref[...]    # (C, T)
    o_ref[...] = (jnp.maximum(w, 0.0) + v0).astype(o_ref.dtype)


# ---------------------------------------------------------------------------
# Fused single-pass kernel (whole (C, HW) slab resident per image):
# x is read from HBM once instead of twice.  Gated on the VMEM budget.
# ---------------------------------------------------------------------------
def fa_fused_kernel(x_ref, wqkv_ref, bqkv_ref, wo_ref, bo_ref, o_ref, *,
                    hw_valid, hw_pad):
    x = x_ref[...].astype(jnp.bfloat16)                              # (C, HW)
    p = jnp.dot(wqkv_ref[...], x,
                preferred_element_type=jnp.float32) + bqkv_ref[...]  # (64+C, HW)
    qn = _l2_normalize_cols(p[:QK_DIM])                              # (32, HW)
    kn = _l2_normalize_cols(p[QK_DIM:2 * QK_DIM])                    # (32, HW)
    v0 = p[2 * QK_DIM:]                                              # (C, HW)
    vr = jnp.maximum(v0, 0.0)
    if hw_valid < hw_pad:
        col = lax.broadcasted_iota(jnp.int32, (1, hw_pad), 1)
        vr = jnp.where(col < hw_valid, vr, 0.0)
    f = lax.dot_general(vr.astype(jnp.bfloat16), kn.astype(jnp.bfloat16),
                        (((1,), (1,)), ((), ())),
                        preferred_element_type=jnp.float32)          # (C, 32)
    # NOTE: keep f in f32 here if tighter accuracy is ever needed.
    g = jnp.dot(wo_ref[...], f.astype(jnp.bfloat16),
                preferred_element_type=jnp.float32)                  # (C, 32)
    w = jnp.dot(g.astype(jnp.bfloat16), qn.astype(jnp.bfloat16),
                preferred_element_type=jnp.float32) + bo_ref[...]    # (C, HW)
    o_ref[...] = (jnp.maximum(w, 0.0) + v0).astype(o_ref.dtype)


# ---------------------------------------------------------------------------
# Wrapper
# ---------------------------------------------------------------------------
def _pick_tile_hw(hw_pad, c, vmem_budget, out_bytes):
    """Largest multiple of 128 dividing hw_pad, under a C-aware VMEM cap."""
    # Per lane column (pass 2): f32 x block (x2 dbuf) + out block (x2 dbuf)
    # + ~4 f32 temporaries of height (32 + C).
    per_col = 8 * c + 2 * out_bytes * c + 16 * (QK_DIM + c)
    cap = (vmem_budget // max(per_col, 1)) // 128 * 128
    gen_cap = 4096 if vmem_budget >= 80 * 1024 * 1024 else 2048
    cap = max(128, min(cap, gen_cap))
    best = 128
    t = 128
    while t <= min(hw_pad, cap):
        if hw_pad % t == 0:
            best = t
        t += 128
    return min(best, hw_pad)


def _fused_fits(c, hw_pad, vmem_budget, out_bytes):
    """Rough per-image VMEM estimate for the fused single-pass kernel."""
    est = hw_pad * (8 * c                      # f32 x block, double-buffered
                    + 2 * out_bytes * c        # out block, double-buffered
                    + 4 * (128 + 4 * c))       # f32 temps (p, qn, kn, v0/vr, w)
    return est <= vmem_budget // 2


def fa_forward(x_nchw, params, *, tile_hw=None, out_dtype=jnp.bfloat16,
               use_fused=None):
    """x_nchw: (N, C, H, W) float32.  Returns (N, C, H, W) in `out_dtype`
    (bf16 by default to halve the output writeback)."""
    wq, bq, wk, bk, wv, bv, wo, bo = params     # w*: (out, in) f32, b*: (out,)
    N, C, H, W = x_nchw.shape
    HW = H * W
    HW_pad = ((HW + 127) // 128) * 128
    budget = _vmem_budget_bytes()
    out_bytes = jnp.dtype(out_dtype).itemsize

    # Channels-first flatten (free for NCHW).  Zero-pad HW up to a multiple of
    # 128 so every block is lane-aligned (unmasked vst, full pipelining);
    # padded columns are masked in the f accumulation and sliced off at the end.
    # NOTE: x stays f32 -- the bf16 cast happens in-kernel right after load, so
    # there is no separate HBM round-trip cast pass in the wrapper.
    x_cf = x_nchw.reshape(N, C, HW)
    if HW_pad != HW:
        x_cf = jnp.pad(x_cf, ((0, 0), (0, 0), (0, HW_pad - HW)))

    # NOTE: for production shapes keep C a multiple of 16 (bf16 sublane packing).
    bo_c = bo.reshape(-1, 1)
    wo_b = wo.astype(jnp.bfloat16)

    if use_fused is None:
        use_fused = tile_hw is None and _fused_fits(C, HW_pad, budget, out_bytes)

    if use_fused:
        w_qkv = jnp.concatenate([wq, wk, wv], axis=0).astype(jnp.bfloat16)
        b_qkv = jnp.concatenate([bq, bk, bv], axis=0).reshape(-1, 1)
        kern = functools.partial(fa_fused_kernel, hw_valid=HW, hw_pad=HW_pad)
        out = pl.pallas_call(
            kern,
            out_shape=jax.ShapeDtypeStruct((N, C, HW_pad), out_dtype),
            grid_spec=pltpu.PrefetchScalarGridSpec(
                num_scalar_prefetch=0,
                grid=(N,),
                in_specs=[
                    pl.BlockSpec((None, C, HW_pad), lambda n: (n, 0, 0)),
                    pl.BlockSpec((2 * QK_DIM + C, C), lambda n: (0, 0)),
                    pl.BlockSpec((2 * QK_DIM + C, 1), lambda n: (0, 0)),
                    pl.BlockSpec((C, C), lambda n: (0, 0)),
                    pl.BlockSpec((C, 1), lambda n: (0, 0)),
                ],
                out_specs=pl.BlockSpec((None, C, HW_pad), lambda n: (n, 0, 0)),
            ),
            compiler_params=pltpu.CompilerParams(
                dimension_semantics=("parallel",),
                vmem_limit_bytes=budget),
        )(x_cf, w_qkv, b_qkv, wo_b, bo_c)
    else:
        if tile_hw is None:
            tile_hw = _pick_tile_hw(HW_pad, C, budget, out_bytes)
        assert HW_pad % tile_hw == 0, "tile_hw must divide the padded H*W"
        n_tiles = HW_pad // tile_hw
        # Split the HW-tile axis into 2 partial accumulators so a core-parallel
        # grid axis exists even at N == 1 (v7x dual TensorCore); partial sums
        # are combined in the wrapper (tiny (N,2,C,32) reduction).
        n_split = 2 if (n_tiles % 2 == 0 and n_tiles >= 2) else 1
        tpc = n_tiles // n_split

        w_kv = jnp.concatenate([wk, wv], axis=0).astype(jnp.bfloat16)   # (32+C, C)
        b_kv = jnp.concatenate([bk, bv], axis=0).reshape(-1, 1)         # (32+C, 1)
        w_qv = jnp.concatenate([wq, wv], axis=0).astype(jnp.bfloat16)   # (32+C, C)
        b_qv = jnp.concatenate([bq, bv], axis=0).reshape(-1, 1)         # (32+C, 1)

        kern1 = functools.partial(fa_pass1_kernel, tile_hw=tile_hw,
                                  tiles_per_split=tpc, hw_valid=HW,
                                  hw_pad=HW_pad)
        f_part = pl.pallas_call(
            kern1,
            out_shape=jax.ShapeDtypeStruct((N, n_split, C, QK_DIM), jnp.float32),
            grid_spec=pltpu.PrefetchScalarGridSpec(
                num_scalar_prefetch=0,
                grid=(N, n_split, tpc),
                in_specs=[
                    pl.BlockSpec((None, C, tile_hw),
                                 lambda n, s, t: (n, 0, s * tpc + t)),
                    pl.BlockSpec((QK_DIM + C, C), lambda n, s, t: (0, 0)),
                    pl.BlockSpec((QK_DIM + C, 1), lambda n, s, t: (0, 0)),
                ],
                out_specs=pl.BlockSpec((None, None, C, QK_DIM),
                                       lambda n, s, t: (n, s, 0, 0)),
            ),
            compiler_params=pltpu.CompilerParams(
                dimension_semantics=("parallel", "parallel", "arbitrary"),
                vmem_limit_bytes=budget),
        )(x_cf, w_kv, b_kv)

        f = f_part.sum(axis=1)                                       # (N, C, 32)
        # Algebraic fold: Wo @ (f @ qn) == (Wo @ f) @ qn.  Precompute g once per
        # image and drop the (C,C)@(C,T) matmul from every pass-2 tile.
        g = jnp.einsum('oc,nck->nok', wo, f)                         # (N, C, 32)

        out = pl.pallas_call(
            fa_pass2_kernel,
            out_shape=jax.ShapeDtypeStruct((N, C, HW_pad), out_dtype),
            grid_spec=pltpu.PrefetchScalarGridSpec(
                num_scalar_prefetch=0,
                grid=(N, n_tiles),
                in_specs=[
                    pl.BlockSpec((None, C, tile_hw), lambda n, t: (n, 0, t)),
                    pl.BlockSpec((None, C, QK_DIM), lambda n, t: (n, 0, 0)),
                    pl.BlockSpec((QK_DIM + C, C), lambda n, t: (0, 0)),
                    pl.BlockSpec((QK_DIM + C, 1), lambda n, t: (0, 0)),
                    pl.BlockSpec((C, 1), lambda n, t: (0, 0)),
                ],
                out_specs=pl.BlockSpec((None, C, tile_hw), lambda n, t: (n, 0, t)),
            ),
            compiler_params=pltpu.CompilerParams(
                dimension_semantics=("parallel", "parallel"),
                vmem_limit_bytes=budget),
        )(x_cf, g, w_qv, b_qv, bo_c)

    if HW_pad != HW:
        out = out[:, :, :HW]
    return out.reshape(N, C, H, W)


# ---------------------------------------------------------------------------
# Deterministic param init (folded Conv+BN) and pure-JAX reference
# ---------------------------------------------------------------------------
def fold_conv_bn(key, in_ch, out_ch):
    """Init a 1x1 Conv2d + BatchNorm2d (inference mode) and fold them into a
    single (out_ch, in_ch) weight + (out_ch,) bias."""
    k1, k2, k3, k4, k5, k6 = jax.random.split(key, 6)
    w = jax.random.normal(k1, (out_ch, in_ch), jnp.float32) * 0.1
    b = jax.random.normal(k2, (out_ch,), jnp.float32) * 0.1
    gamma = 1.0 + 0.1 * jax.random.normal(k3, (out_ch,), jnp.float32)
    beta = 0.1 * jax.random.normal(k4, (out_ch,), jnp.float32)
    running_mean = 0.1 * jax.random.normal(k5, (out_ch,), jnp.float32)
    running_var = jnp.abs(1.0 + 0.1 * jax.random.normal(k6, (out_ch,), jnp.float32))
    scale = gamma / jnp.sqrt(running_var + EPS_BN)
    return w * scale[:, None], (b - running_mean) * scale + beta


def fa_reference(x_nchw, params):
    """Pure-JAX f32 reference mirroring the PyTorch forward (with folded BN)."""
    wq, bq, wk, bk, wv, bv, wo, bo = params
    N, C, H, W = x_nchw.shape
    HW = H * W
    x = x_nchw.reshape(N, C, HW)
    q = jnp.einsum('oc,ncs->nos', wq, x) + bq[None, :, None]
    k = jnp.einsum('oc,ncs->nos', wk, x) + bk[None, :, None]
    v0 = jnp.einsum('oc,ncs->nos', wv, x) + bv[None, :, None]
    q_ = jnp.transpose(q, (0, 2, 1))
    qn = q_ / jnp.maximum(jnp.linalg.norm(q_, axis=2, keepdims=True), EPS_NORM)
    kn = k / jnp.maximum(jnp.linalg.norm(k, axis=1, keepdims=True), EPS_NORM)
    v_ = jnp.transpose(v0, (0, 2, 1))
    vr = jnp.maximum(v_, 0.0)
    f = jnp.einsum('nks,nsc->nkc', kn, vr)
    y = jnp.einsum('nsk,nkc->nsc', qn, f)
    y_cf = jnp.transpose(y, (0, 2, 1))
    w = jnp.maximum(jnp.einsum('oc,ncs->nos', wo, y_cf) + bo[None, :, None], 0.0)
    return (w + v0).reshape(N, C, H, W)


if __name__ == "__main__":
    num_ch = 8
    N, C = 2, num_ch

    key = jax.random.PRNGKey(0)
    kx1, kx2, kq, kk, kv, ko = jax.random.split(key, 6)

    wq, bq = fold_conv_bn(kq, C, QK_DIM)
    wk, bk = fold_conv_bn(kk, C, QK_DIM)
    wv, bv = fold_conv_bn(kv, C, C)
    wo, bo = fold_conv_bn(ko, C, C)
    params = (wq, bq, wk, bk, wv, bv, wo, bo)

    def check(out, ref, tag):
        assert out.shape == ref.shape, tag
        o32 = out.astype(jnp.float32)
        # bf16 MXU operands, bf16 output -> loosened tolerance vs f32 reference.
        assert jnp.allclose(o32, ref, rtol=4e-2, atol=4e-2), (
            tag + ": max|d|=" + str(float(jnp.max(jnp.abs(o32 - ref)))))

    # Case 1: 128-aligned spatial map, auto path (fused single-pass; x read once).
    x1 = jax.random.normal(kx1, (N, C, 16, 16), jnp.float32)
    ref1 = fa_reference(x1, params)
    out1 = jax.block_until_ready(fa_forward(x1, params))
    check(out1, ref1, "fused")

    # Case 2: forced two-pass with tile_hw=128 -> exercises the f accumulator,
    # the split-HW (core-parallel) pass-1 grid and the folded g = Wo@f pass 2.
    out2 = jax.block_until_ready(
        fa_forward(x1, params, tile_hw=128, use_fused=False))
    check(out2, ref1, "two-pass")

    # Case 3: spatial size not a multiple of 128 -> padded + masked pass 1.
    x3 = jax.random.normal(kx2, (N, C, 10, 10), jnp.float32)
    ref3 = fa_reference(x3, params)
    out3 = jax.block_until_ready(fa_forward(x3, params, use_fused=False))
    check(out3, ref3, "two-pass-padded")
    out4 = jax.block_until_ready(fa_forward(x3, params, use_fused=True))
    check(out4, ref3, "fused-padded")

    print("KERNEL_OK")
</pallas_src>

<mosaic_0001>
module attributes {stable_mosaic.version = 11 : i64} {
  func.func @fa_fused_kernel(%arg0: i32, %arg1: memref<1x8x256xf32, #tpu.memory_space<vmem>>, %arg2: memref<72x8xbf16, #tpu.memory_space<vmem>>, %arg3: memref<72x1xf32, #tpu.memory_space<vmem>>, %arg4: memref<8x8xbf16, #tpu.memory_space<vmem>>, %arg5: memref<8x1xf32, #tpu.memory_space<vmem>>, %arg6: memref<1x8x256xbf16, #tpu.memory_space<vmem>>) attributes {dimension_semantics = [#tpu.dimension_semantics<parallel>], iteration_bounds = array<i64: 2>, scalar_prefetch = 0 : i64, scratch_operands = 0 : i64, tpu.core_type = #tpu.core_type<tc>, window_params = [{transform_indices = @transform_0, window_bounds = array<i64: 1, 8, 256>}, {pipeline_mode = #tpu.pipeline_mode<synchronous>, transform_indices = @transform_1, window_bounds = array<i64: 72, 8>}, {pipeline_mode = #tpu.pipeline_mode<synchronous>, transform_indices = @transform_2, window_bounds = array<i64: 72, 1>}, {pipeline_mode = #tpu.pipeline_mode<synchronous>, transform_indices = @transform_3, window_bounds = array<i64: 8, 8>}, {pipeline_mode = #tpu.pipeline_mode<synchronous>, transform_indices = @transform_4, window_bounds = array<i64: 8, 1>}, {transform_indices = @transform_5, window_bounds = array<i64: 1, 8, 256>}]} {
    %c0 = arith.constant 0 : index
    %c0_0 = arith.constant 0 : index
    %c0_1 = arith.constant 0 : index
    %0 = vector.load %arg1[%c0, %c0_0, %c0_1] : memref<1x8x256xf32, #tpu.memory_space<vmem>>, vector<1x8x256xf32>
    %1 = vector.shape_cast %0 : vector<1x8x256xf32> to vector<8x256xf32>
    %2 = arith.truncf %1 : vector<8x256xf32> to vector<8x256xbf16>
    %c0_2 = arith.constant 0 : index
    %c0_3 = arith.constant 0 : index
    %3 = vector.load %arg2[%c0_2, %c0_3] : memref<72x8xbf16, #tpu.memory_space<vmem>>, vector<72x8xbf16>
    %cst = arith.constant dense<0.000000e+00> : vector<72x256xf32>
    %4 = tpu.matmul %3, %2, %cst {dimension_numbers = #tpu.dot_dimension_numbers<[1], [0], [0], [1], [0, 0, 1, 1], [], []>} : vector<72x8xbf16>, vector<8x256xbf16>, vector<72x256xf32> -> vector<72x256xf32>
    %c0_4 = arith.constant 0 : index
    %c0_5 = arith.constant 0 : index
    %5 = vector.load %arg3[%c0_4, %c0_5] : memref<72x1xf32, #tpu.memory_space<vmem>>, vector<72x1xf32>
    %6 = vector.broadcast %5 : vector<72x1xf32> to vector<72x256xf32>
    %7 = arith.addf %4, %6 : vector<72x256xf32>
    %8 = vector.extract_strided_slice %7 {offsets = [0, 0], sizes = [32, 256], strides = [1, 1]} : vector<72x256xf32> to vector<32x256xf32>
    %9 = arith.mulf %8, %8 : vector<32x256xf32>
    %cst_6 = arith.constant dense<0.000000e+00> : vector<256xf32>
    %10 = vector.multi_reduction <add>, %9, %cst_6 [0] : vector<32x256xf32> to vector<256xf32>
    %11 = vector.shape_cast %10 : vector<256xf32> to vector<1x256xf32>
    %cst_7 = arith.constant 1.000000e-24 : f32
    %12 = vector.broadcast %cst_7 : f32 to vector<1x256xf32>
    %13 = arith.maximumf %11, %12 : vector<1x256xf32>
    %14 = math.rsqrt %13 : vector<1x256xf32>
    %15 = vector.broadcast %14 : vector<1x256xf32> to vector<32x256xf32>
    %16 = arith.mulf %8, %15 : vector<32x256xf32>
    %17 = vector.extract_strided_slice %7 {offsets = [32, 0], sizes = [32, 256], strides = [1, 1]} : vector<72x256xf32> to vector<32x256xf32>
    %18 = arith.mulf %17, %17 : vector<32x256xf32>
    %cst_8 = arith.constant dense<0.000000e+00> : vector<256xf32>
    %19 = vector.multi_reduction <add>, %18, %cst_8 [0] : vector<32x256xf32> to vector<256xf32>
    %20 = vector.shape_cast %19 : vector<256xf32> to vector<1x256xf32>
    %cst_9 = arith.constant 1.000000e-24 : f32
    %21 = vector.broadcast %cst_9 : f32 to vector<1x256xf32>
    %22 = arith.maximumf %20, %21 : vector<1x256xf32>
    %23 = math.rsqrt %22 : vector<1x256xf32>
    %24 = vector.broadcast %23 : vector<1x256xf32> to vector<32x256xf32>
    %25 = arith.mulf %17, %24 : vector<32x256xf32>
    %26 = vector.extract_strided_slice %7 {offsets = [64, 0], sizes = [8, 256], strides = [1, 1]} : vector<72x256xf32> to vector<8x256xf32>
    %cst_10 = arith.constant 0.000000e+00 : f32
    %27 = vector.broadcast %cst_10 : f32 to vector<8x256xf32>
    %28 = arith.maximumf %26, %27 : vector<8x256xf32>
    %29 = arith.truncf %28 : vector<8x256xf32> to vector<8x256xbf16>
    %30 = arith.truncf %25 : vector<32x256xf32> to vector<32x256xbf16>
    %cst_11 = arith.constant dense<0.000000e+00> : vector<8x32xf32>
    %31 = tpu.matmul %29, %30, %cst_11 {dimension_numbers = #tpu.dot_dimension_numbers<[1], [1], [0], [0], [0, 0, 1, 0], [], []>} : vector<8x256xbf16>, vector<32x256xbf16>, vector<8x32xf32> -> vector<8x32xf32>
    %c0_12 = arith.constant 0 : index
    %c0_13 = arith.constant 0 : index
    %32 = vector.load %arg4[%c0_12, %c0_13] : memref<8x8xbf16, #tpu.memory_space<vmem>>, vector<8x8xbf16>
    %33 = arith.truncf %31 : vector<8x32xf32> to vector<8x32xbf16>
    %cst_14 = arith.constant dense<0.000000e+00> : vector<8x32xf32>
    %34 = tpu.matmul %32, %33, %cst_14 {dimension_numbers = #tpu.dot_dimension_numbers<[1], [0], [0], [1], [0, 0, 1, 1], [], []>} : vector<8x8xbf16>, vector<8x32xbf16>, vector<8x32xf32> -> vector<8x32xf32>
    %35 = arith.truncf %34 : vector<8x32xf32> to vector<8x32xbf16>
    %36 = arith.truncf %16 : vector<32x256xf32> to vector<32x256xbf16>
    %cst_15 = arith.constant dense<0.000000e+00> : vector<8x256xf32>
    %37 = tpu.matmul %35, %36, %cst_15 {dimension_numbers = #tpu.dot_dimension_numbers<[1], [0], [0], [1], [0, 0, 1, 1], [], []>} : vector<8x32xbf16>, vector<32x256xbf16>, vector<8x256xf32> -> vector<8x256xf32>
    %c0_16 = arith.constant 0 : index
    %c0_17 = arith.constant 0 : index
    %38 = vector.load %arg5[%c0_16, %c0_17] : memref<8x1xf32, #tpu.memory_space<vmem>>, vector<8x1xf32>
    %39 = vector.broadcast %38 : vector<8x1xf32> to vector<8x256xf32>
    %40 = arith.addf %37, %39 : vector<8x256xf32>
    %cst_18 = arith.constant 0.000000e+00 : f32
    %41 = vector.broadcast %cst_18 : f32 to vector<8x256xf32>
    %42 = arith.maximumf %40, %41 : vector<8x256xf32>
    %43 = arith.addf %42, %26 : vector<8x256xf32>
    %44 = arith.truncf %43 : vector<8x256xf32> to vector<8x256xbf16>
    %c0_19 = arith.constant 0 : index
    %c0_20 = arith.constant 0 : index
    %c0_21 = arith.constant 0 : index
    %45 = vector.load %arg6[%c0_19, %c0_20, %c0_21] : memref<1x8x256xbf16, #tpu.memory_space<vmem>>, vector<1x8x256xbf16>
    %46 = vector.shape_cast %45 : vector<1x8x256xbf16> to vector<8x256xbf16>
    %47 = vector.shape_cast %44 : vector<8x256xbf16> to vector<1x8x256xbf16>
    tpu.vector_store %arg6[%c0_19, %c0_20, %c0_21], %47 {strides = array<i32>} : memref<1x8x256xbf16, #tpu.memory_space<vmem>>, vector<1x8x256xbf16>,
    return
  }
  func.func @transform_0(%arg0: i32) -> (i32, i32, i32) {
    %c0_i32 = arith.constant 0 : i32
    %c0_i32_0 = arith.constant 0 : i32
    %c0_i32_1 = arith.constant 0 : i32
    return %arg0, %c0_i32, %c0_i32_0 : i32, i32, i32
  }
  func.func @transform_1(%arg0: i32) -> (i32, i32) {
    %c0_i32 = arith.constant 0 : i32
    %c0_i32_0 = arith.constant 0 : i32
    %c0_i32_1 = arith.constant 0 : i32
    return %c0_i32, %c0_i32_0 : i32, i32
  }
  func.func @transform_2(%arg0: i32) -> (i32, i32) {
    %c0_i32 = arith.constant 0 : i32
    %c0_i32_0 = arith.constant 0 : i32
    %c0_i32_1 = arith.constant 0 : i32
    return %c0_i32, %c0_i32_0 : i32, i32
  }
  func.func @transform_3(%arg0: i32) -> (i32, i32) {
    %c0_i32 = arith.constant 0 : i32
    %c0_i32_0 = arith.constant 0 : i32
    %c0_i32_1 = arith.constant 0 : i32
    return %c0_i32, %c0_i32_0 : i32, i32
  }
  func.func @transform_4(%arg0: i32) -> (i32, i32) {
    %c0_i32 = arith.constant 0 : i32
    %c0_i32_0 = arith.constant 0 : i32
    %c0_i32_1 = arith.constant 0 : i32
    return %c0_i32, %c0_i32_0 : i32, i32
  }
  func.func @transform_5(%arg0: i32) -> (i32, i32, i32) {
    %c0_i32 = arith.constant 0 : i32
    %c0_i32_0 = arith.constant 0 : i32
    %c0_i32_1 = arith.constant 0 : i32
    return %arg0, %c0_i32, %c0_i32_0 : i32, i32, i32
  }
}

</mosaic_0001>

<bundles_post_ra>
// kernel: tpu_custom_call.1
= control target key start
LH: loop header
LB: loop body
LE: loop exit
PB: predicated region body
PF: predicated region fallthrough
CT: control target
= control target key end

     0   :  { %10 = vsyncpa [#allocation3], 0  ;;  %s1176_s0 = inlined_call_operand.vmem [shape: f32[2,8,256], index: 0, kind: input, shape index: {}]   ;;  %s1177_s1 = inlined_call_operand.vmem [shape: bf16[72,8], index: 1, kind: input, shape index: {}]   ;;  %s1178_s2 = inlined_call_operand.vmem [shape: f32[72,1], index: 2, kind: input, shape index: {}]   ;;  %s1179_s3 = inlined_call_operand.vmem [shape: bf16[8,8], index: 3, kind: input, shape index: {}]   ;;  %s1180_s4 = inlined_call_operand.vmem [shape: f32[8,1], index: 4, kind: input, shape index: {}]   ;;  %s1181_s5 = inlined_call_operand.hbm [shape: bf16[2,8,256], index: 5, kind: output, shape index: {}]  }
   0x1   :  { %12 = vsyncpa [#allocation3 + $0x1], 0  ;;  %s925_s18 = smov 0   ;;  %s927_s19 = smov 0  }
   0x2   :  { %s929_s20 = smov 0   ;;  %s931_s21 = smov 0  }
   0x3 LB: > { %s946_s22 = sadd.s32 4294967295, %s889_s21   ;;  %s733_s23 = sadd.s32 4294967294, %s889_s21   ;;  %s889_s21 = sphi %s931_s21, %s1187_s21   ;;  %s885_s20 = sphi %s929_s20, %s1186_s20   ;;  %s881_s19 = sphi %s927_s19, %s1185_s19   ;;  %s877_s18 = sphi %s925_s18, %s1184_s18  }
   0x4   : > { %s950_s24 = sadd.s32 1, %s889_s21   ;;  %s135_s25 = sadd.s32 1, %s885_s20 }
   0x5   : > { %s132_s26 = ssub.s32 %s889_s21, %s950_s24  ;;  %p145_p0 = scmp.ne.s32.totalorder %s885_s20, %s881_s19 }
   0x6   : > { %p133_p1 = scmp.eq.s32.totalorder %s132_s26, 0  ;;  %p146_p2 = scmp.eq.s32.totalorder %s946_s22, 1 }
   0x7   : > { %p151_p3 = scmp.ne.s32.totalorder %s881_s19, %s877_s18  ;;  %p152_p4 = scmp.eq.s32.totalorder %s733_s23, 1 }
   0x8   : > { %s961_s27 = scalar_select %p133_p1, %s885_s20, %s135_s25  }
   0x9   : > { %p963_p5 = por %p146_p2, %p145_p0  ;;  %p967_p6 = por %p152_p4, %p151_p3 }
   0xa   : > { %p736_p7 = scmp.ge.s32.totalorder %s889_s21, 1  ;;  %p190_p8 = scmp.lt.s32.totalorder %s889_s21, 3 }
   0xc   : > { %p191_p9 = pnand %p736_p7, %p190_p8 }
   0xd   : > { %p218_p10 = scmp.lt.s32.totalorder (!%p191_p9), %s946_s22, 1  ;;  %v891_v0 = vmov (!%p191_p9), 0   ;;  %v241_v1 = vld [vmem:[%s1178_s2 + $0x20] sm:$0xff] (!%p191_p9)  ;;  %v243_v2 = vld [vmem:[%s1178_s2 + $0x30] sm:$0xff] (!%p191_p9)  ;;  %vm330_vm0 = vcmask (!%p191_p9), 1043456   ;;  %v242_v7 = vld [vmem:[%s1178_s2 + $0x28] sm:$0xff] (!%p191_p9) }
   0xe   : > { %194 = sbr.rel (%p191_p9) target bundleno = 989 (0x3dd), region = 40  ;;  %369 = vmatprep.mubr.bf16.mxu0 (!%p191_p9), %v891_v0  ;;  %812 = vset.pattern.permute.xlu0 (!%p191_p9), %v891_v0  ;;  %v244_v8 = vld [vmem:[%s1178_s2 + $0x38] sm:$0xff] (!%p191_p9)  ;;  %v814_v10 = vld [vmem:[%s1177_s1] sm:$0xff] (!%p191_p9)   ;;  %vm314_vm1 = vcmask (!%p191_p9), 64512   ;;  %v238_v13 = vld [vmem:[%s1178_s2 + $0x8] sm:$0xff] (!%p191_p9)  ;;  %vm893_vm2 = vmmov (!%p191_p9), 0  }
   0xf   : > { %813 = vset.pattern.permute.xlu1 (!%p191_p9), %v891_v0  ;;  %268 = vperm.xlu0 (!%p191_p9), %812, %v241_v1   ;;  %v245_v11 = vld [vmem:[%s1178_s2 + $0x40] sm:$0xff] (!%p191_p9)  ;;  %v239_v14 = vld [vmem:[%s1178_s2 + $0x10] sm:$0xff] (!%p191_p9)  ;;  %v815_v15 = vld [vmem:[%s1177_s1 + $0x8] sm:$0xff] (!%p191_p9)   ;;  %vm601_vm3 = vcmask (!%p191_p9), 261120   ;;  %s215_s10 = sand.u32 (!%p191_p9), 1, %s881_s19   ;;  %s761_s12 = sshll.u32 (!%p191_p9), %s946_s22, 7 }
  0x10   : > { %278 = vperm.xlu1 (!%p191_p9), %813, %v243_v2   ;;  %v237_v12 = vld [vmem:[%s1178_s2] sm:$0xff] (!%p191_p9)  ;;  %v240_v16 = vld [vmem:[%s1178_s2 + $0x18] sm:$0xff] (!%p191_p9)  ;;  %v816_v18 = vld [vmem:[%s1177_s1 + $0x10] sm:$0xff] (!%p191_p9)   ;;  %s737_s11 = sshll.u32 (!%p191_p9), %s215_s10, 3  ;;  %s1134_s17 = scalar_lea.hbm (!%p191_p9), %s1181_s5, %s761_s12 }
  0x11   : > { %v595_v17 = vld [vmem:[%s1180_s4] sm:$0xff] (!%p191_p9)  ;;  %v817_v19 = vld [vmem:[%s1177_s1 + $0x18] sm:$0xff] (!%p191_p9)   ;;  %s217_s13 = scalar_lea.vmem (!%p191_p9), [#allocation2], %s737_s11  ;;  %s660_s23 = scalar_lea.sflag (!%p191_p9), [#allocation3], %s215_s10 }
  0x12   : > { %v818_v20 = vld [vmem:[%s1177_s1 + $0x20] ss:$0 sps:$4 sm:$0xff] (!%p191_p9)   ;;  %s674_s14 = sshll.u32 (!%p191_p9), %s217_s13, 4  ;;  %s1136_s14 = int_to_ptr.vmem [resolvable:$true] %s674_s14 }
  0x13   : > { %273 = vperm.xlu0 (!%p191_p9), %812, %v242_v7   ;;  %s827_s25 = scalar_lea.vmem (!%p191_p9), %s1136_s14, 128 }
  0x14   : > { %283 = vperm.xlu1 (!%p191_p9), %813, %v244_v8   ;;  %p828_p11 = scmp.ne.s32.totalorder (!%p191_p9), %s1136_s14, %s827_s25 }
  0x15   : > { %s219_s30 = scalar_select %p218_p10, %s946_s22, 1 }
  0x16   : > { %p829_p12 = pnand %p828_p11, %p963_p5  ;;  %s894_s22 = smov [#allocation2]  }
  0x17   : > { %s759_s6 = sshll.u32 %s219_s30, 4  ;;  %288 = vperm.xlu0 %812, %v245_v11   ;;  %s831_s26 = sshll.u32 %s894_s22, 4  ;;  %s832_s26 = int_to_ptr.vmem [resolvable:$false] %s831_s26 }
  0x18   : > { %s222_s9 = scalar_lea.vmem %s1176_s0, %s759_s6  ;;  %248 = vperm.xlu1 %813, %v237_v12   ;;  %p830_p13 = pneg %p829_p12 }
  0x19   : > { %v225_v3 = vld [vmem:[%s222_s9 + $0x8] sm:$0xff]  ;;  %v224_v4 = vld [vmem:[%s222_s9] sm:$0xff]  ;;  %s833_s30 = scalar_lea.vmem %s832_s26, 256  ;;  %p834_p0 = scmp.lt.s32.totalorder %s1136_s14, %s832_s26 }
  0x1a   : > { %v227_v5 = vpack.c.bf16 %v225_v3, %v225_v3  ;;  %v226_v6 = vpack.c.bf16 %v224_v4, %v224_v4  ;;  %p835_p1 = scmp.lt.s32.totalorder %s833_s30, %s827_s25 }
  0x1b   : > { %253 = vperm.xlu0 %812, %v238_v13  }
  0x1c   : > { %745 = vmatprep.subr.msk.bf16.mxu0 %vm330_vm0, %v227_v5  ;;  %v332_v9 = vsel %vm330_vm0, %v226_v6, 0  ;;  %258 = vperm.xlu1 %813, %v239_v14   ;;  %p836_p2 = por %p835_p1, %p834_p0 }
  0x1d   : > { %338 = vmatpush1.bf16.msra.mxu0 %v332_v9 }
  0x1e   : > { %p837_p3 = pnand %p836_p2, %p830_p13 }
  0x1f   : > { %263 = vperm.xlu0 %812, %v240_v16  }
  0x20   : > { %746 = vmatmul.mubr.msk.bf16.vlgmr.msra.gmra.mrb[0].mxu0 %vm314_vm1, %v814_v10  ;;  %598 = vperm.xlu1 %813, %v595_v17  }
  0x21   : > { %379 = vmatprep.mubr.bf16.mxu0 %v891_v0 }
  0x28   : > { %747 = vmatmul.mubr.msk.bf16.gmra.mrb[4].mxu0 %vm314_vm1, %v815_v15 }
  0x29   : > { %389 = vmatprep.mubr.bf16.mxu0 %v891_v0 }
  0x30   : > { %748 = vmatmul.mubr.msk.bf16.gmra.mrb[8].mxu0 %vm314_vm1, %v816_v18 }
  0x31   : > { %399 = vmatprep.mubr.bf16.mxu0 %v891_v0 }
  0x38   : > { %749 = vmatmul.mubr.msk.bf16.gmra.mrb[12].mxu0 %vm314_vm1, %v817_v19 }
  0x39   : > { %409 = vmatprep.mubr.bf16.mxu0 %v891_v0 }
  0x40   : > { %750 = vmatmul.mubr.msk.bf16.gmra.mrb[16].mxu0 %vm314_vm1, %v818_v20 }
  0x8e   : > { %v269_v21 = vpop.permute.xlu0 %268 }
  0x8f   : > { %v1037_v22 = vpop.permute.xlu1 %278 }
  0x92   : > { %v274_v23 = vpop.permute.xlu0 %273 }
  0x93   : > { %v1039_v24 = vpop.permute.xlu1 %283 }
  0x96   : > { %v1041_v25 = vpop.permute.xlu0 %288 }
  0x97   : > { %v249_v26 = vpop.permute.xlu1 %248 }
  0x9a   : > { %v254_v28 = vpop.permute.xlu0 %253 }
  0x9b   : > { %v259_v40 = vpop.permute.xlu1 %258 }
  0x9e   : > { %v264_v44 = vpop.permute.xlu0 %263 }
  0xf3   : > { %v371_v27 = vpop.f32.mrb[0].mxu0 }
  0xf4   : > { %v1043_v29 = vadd.f32 %v371_v27, %v249_v26  ;;  %v373_v30 = vpop.f32.mrb[1].mxu0 }
  0xf5   : > { %v1045_v31 = vadd.f32 %v373_v30, %v249_v26  ;;  %v375_v32 = vpop.f32.mrb[2].mxu0 }
  0xf6   : > { %v1047_v33 = vadd.f32 %v375_v32, %v254_v28  ;;  %v377_v34 = vpop.f32.mrb[3].mxu0  ;;  %v418_v36 = vmul.f32 %v1043_v29, %v1043_v29 }
  0xf7   : > { %v1049_v35 = vadd.f32 %v377_v34, %v254_v28  ;;  %v419_v38 = vmul.f32 %v1045_v31, %v1045_v31 }
  0xf8   : > { %v420_v37 = vmul.f32 %v1047_v33, %v1047_v33 }
  0xf9   : > { %v421_v39 = vmul.f32 %v1049_v35, %v1049_v35 }
  0xfa   : > { %v426_v41 = vadd.f32 %v420_v37, %v418_v36 }
  0xfb   : > { %v435_v42 = vadd.f32 %v421_v39, %v419_v38  ;;  %v381_v43 = vpop.f32.mrb[4].mxu0 }
  0xfc   : > { %v1059_v45 = vadd.f32 %v381_v43, %v259_v40  ;;  %v383_v46 = vpop.f32.mrb[5].mxu0 }
  0xfd   : > { %v1061_v47 = vadd.f32 %v383_v46, %v259_v40  ;;  %v385_v48 = vpop.f32.mrb[6].mxu0 }
  0xfe   : > { %v422_v49 = vmul.f32 %v1059_v45, %v1059_v45  ;;  %v1065_v50 = vadd.f32 %v385_v48, %v264_v44  ;;  %v387_v51 = vpop.f32.mrb[7].mxu0 }
  0xff   : > { %v423_v52 = vmul.f32 %v1061_v47, %v1061_v47  ;;  %v1069_v53 = vadd.f32 %v387_v51, %v264_v44 }
 0x100   : > { %v427_v54 = vadd.f32 %v426_v41, %v422_v49  ;;  %v424_v55 = vmul.f32 %v1065_v50, %v1065_v50 }
 0x101   : > { %v436_v56 = vadd.f32 %v435_v42, %v423_v52  ;;  %v425_v57 = vmul.f32 %v1069_v53, %v1069_v53 }
 0x102   : > { %v428_v58 = vadd.f32 %v427_v54, %v424_v55 }
 0x103   : > { %v437_v59 = vadd.f32 %v436_v56, %v425_v57  ;;  %v391_v60 = vpop.f32.mrb[8].mxu0 }
 0x104   : > { %v429_v61 = vrot.slane %v428_v58, 4  ;;  %v1075_v62 = vadd.f32 %v391_v60, %v269_v21  ;;  %v393_v63 = vpop.f32.mrb[9].mxu0 }
 0x105   : > { %v438_v1 = vrot.slane %v437_v59, 4  ;;  %v1077_v2 = vadd.f32 %v393_v63, %v269_v21  ;;  %v395_v3 = vpop.f32.mrb[10].mxu0 }
 0x106   : > { %v430_v4 = vadd.f32 %v429_v61, %v428_v58  ;;  %v1079_v5 = vadd.f32 %v395_v3, %v274_v23  ;;  %v397_v6 = vpop.f32.mrb[11].mxu0  ;;  %v456_v10 = vmul.f32 %v1075_v62, %v1075_v62 }
 0x107   : > { %v439_v7 = vadd.f32 %v438_v1, %v437_v59  ;;  %v1081_v8 = vadd.f32 %v397_v6, %v274_v23  ;;  %v457_v13 = vmul.f32 %v1077_v2, %v1077_v2 }
 0x108   : > { %v431_v9 = vrot.slane %v430_v4, 2  ;;  %v458_v11 = vmul.f32 %v1079_v5, %v1079_v5 }
 0x109   : > { %v440_v12 = vrot.slane %v439_v7, 2  ;;  %v459_v14 = vmul.f32 %v1081_v8, %v1081_v8 }
 0x10a   : > { %v432_v15 = vadd.f32 %v431_v9, %v430_v4  ;;  %v464_v16 = vadd.f32 %v458_v11, %v456_v10 }
 0x10b   : > { %v441_v17 = vadd.f32 %v440_v12, %v439_v7  ;;  %v473_v18 = vadd.f32 %v459_v14, %v457_v13  ;;  %v401_v19 = vpop.f32.mrb[12].mxu0 }
 0x10c   : > { %v433_v20 = vrot.slane %v432_v15, 1  ;;  %v1092_v21 = vadd.f32 %v401_v19, %v1037_v22  ;;  %v403_v23 = vpop.f32.mrb[13].mxu0 }
 0x10d   : > { %v442_v26 = vrot.slane %v441_v17, 1  ;;  %v1095_v27 = vadd.f32 %v403_v23, %v1037_v22  ;;  %v405_v28 = vpop.f32.mrb[14].mxu0 }
 0x10e   : > { %v434_v30 = vadd.f32 %v433_v20, %v432_v15  ;;  %v460_v32 = vmul.f32 %v1092_v21, %v1092_v21  ;;  %v406_v34 = vadd.f32 %v405_v28, %v1039_v24  ;;  %v407_v36 = vpop.f32.mrb[15].mxu0 }
 0x10f   : > { %v443_v37 = vadd.f32 %v442_v26, %v441_v17  ;;  %v461_v38 = vmul.f32 %v1095_v27, %v1095_v27  ;;  %v408_v39 = vadd.f32 %v407_v36, %v1039_v24 }
 0x110   : > { %v444_v40 = vmax.f32 %v434_v30, 1e-24  ;;  %v465_v41 = vadd.f32 %v464_v16, %v460_v32  ;;  %v462_v42 = vmul.f32 %v406_v34, %v406_v34 }
 0x111   : > { %v445_v43 = vmax.f32 %v443_v37, 1e-24  ;;  %v474_v22 = vadd.f32 %v473_v18, %v461_v38  ;;  %v463_v44 = vmul.f32 %v408_v39, %v408_v39 }
 0x112   : > { %819 = vrsqrt.f32 %v444_v40  ;;  %v466_v46 = vadd.f32 %v465_v41, %v462_v42 }
 0x113   : > { %821 = vrsqrt.f32 %v445_v43  ;;  %v475_v48 = vadd.f32 %v474_v22, %v463_v44  ;;  %v411_v49 = vpop.f32.mrb[16].mxu0 }
 0x114   : > { %v467_v51 = vrot.slane %v466_v46, 4  ;;  %v413_v52 = vpop.f32.mrb[17].mxu0 }
 0x115   : > { %v476_v54 = vrot.slane %v475_v48, 4  ;;  %v1104_v55 = vadd.f32 %v413_v52, %v1041_v25  ;;  %v415_v56 = vpop.f32.mrb[18].mxu0  ;;  %v599_v52 = vpop.permute.xlu1 %598 }
 0x116   : > { %v468_v57 = vadd.f32 %v467_v51, %v466_v46  ;;  %v416_v24 = vpop.f32.mrb[19].mxu0 }
 0x117   : > { %v477_v58 = vadd.f32 %v476_v54, %v475_v48  ;;  %v495_v59 = vmax.f32 %v1104_v55, 0.0 }
 0x118   : > { %v469_v60 = vrot.slane %v468_v57, 2 }
 0x119   : > { %v478_v61 = vrot.slane %v477_v58, 2  ;;  %v497_v63 = vpack.c.bf16 %v495_v59, %v495_v59 }
 0x11a   : > { %v470_v1 = vadd.f32 %v469_v60, %v468_v57 }
 0x11b   : > { %v479_v3 = vadd.f32 %v478_v61, %v477_v58  ;;  %534 = vmatprep.mubr.bf16.mxu1 %v497_v63 }
 0x11c   : > { %v820_v4 = vpop.eup %819  ;;  %v471_v6 = vrot.slane %v470_v1, 1 }
 0x11d   : > { %v822_v7 = vpop.eup %821  ;;  %v452_v9 = vmul.f32 %v820_v4, %v1059_v45  ;;  %v454_v10 = vmul.f32 %v820_v4, %v1065_v50  ;;  %v480_v11 = vrot.slane %v479_v3, 1  ;;  %v448_v12 = vmul.f32 %v820_v4, %v1043_v29 }
 0x11e   : > { %v455_v13 = vmul.f32 %v822_v7, %v1069_v53  ;;  %v472_v14 = vadd.f32 %v471_v6, %v470_v1  ;;  %v449_v15 = vmul.f32 %v822_v7, %v1045_v31  ;;  %v451_v16 = vmul.f32 %v822_v7, %v1049_v35 }
 0x11f   : > { %v593_v17 = vpack.c.bf16 %v454_v10, %v452_v9  ;;  %v481_v18 = vadd.f32 %v480_v11, %v479_v3  ;;  %v450_v19 = vmul.f32 %v820_v4, %v1047_v33  ;;  %v453_v20 = vmul.f32 %v822_v7, %v1061_v47 }
 0x120   : > { %v482_v23 = vmax.f32 %v472_v14, 1e-24  ;;  %v592_v45 = vpack.c.bf16 %v451_v16, %v449_v15 }
 0x121   : > { %v483_v26 = vmax.f32 %v481_v18, 1e-24  ;;  %v591_v50 = vpack.c.bf16 %v450_v19, %v448_v12  ;;  %v594_v28 = vpack.c.bf16 %v455_v13, %v453_v20 }
 0x122   : > { %823 = vrsqrt.f32 %v482_v23 }
 0x123   : > { %825 = vrsqrt.f32 %v483_v26 }
 0x12c   : > { %v824_v29 = vpop.eup %823 }
 0x12d   : > { %v826_v53 = vpop.eup %825  ;;  %v492_v30 = vmul.f32 %v824_v29, %v406_v34  ;;  %v486_v31 = vmul.f32 %v824_v29, %v1075_v62  ;;  %v488_v35 = vmul.f32 %v824_v29, %v1079_v5  ;;  %v490_v32 = vmul.f32 %v824_v29, %v1092_v21 }
 0x12e   : > { %v493_v36 = vmul.f32 %v826_v53, %v408_v39  ;;  %v487_v33 = vmul.f32 %v826_v53, %v1077_v2  ;;  %v489_v47 = vmul.f32 %v826_v53, %v1081_v8  ;;  %v491_v37 = vmul.f32 %v826_v53, %v1095_v27 }
 0x12f   : > { %v498_v38 = vpack.c.bf16 %v488_v35, %v486_v31  ;;  %v500_v40 = vpack.c.bf16 %v492_v30, %v490_v32  ;;  %v412_v62 = vadd.f32 %v411_v49, %v1041_v25  ;;  %v892_v21 = vmov 0.0   ;;  %v542_v25 = vld [vmem:[%s1179_s3] sm:$0xf] }
 0x130   : > { %v499_v41 = vpack.c.bf16 %v489_v47, %v487_v33  ;;  %v501_v42 = vpack.c.bf16 %v493_v36, %v491_v37 }
 0x131   : > { %v494_v5 = vmax.f32 %v412_v62, 0.0 }
 0x132   : > { %502 = vmatprep.subr.bf16.mxu1 %v499_v41 }
 0x133   : > { %503 = vmatpush1.bf16.xpose.msra.mxu1 %v498_v38  ;;  %v496_v34 = vpack.c.bf16 %v494_v5, %v494_v5 }
 0x134   : > { %504 = vmatprep.subr.bf16.mxu1 %v501_v42 }
 0x13b   : > { %505 = vmatpush1.bf16.xpose.msra.mxu1 %v500_v40 }
 0x13c   : > { %764 = vmatprep.subr.bf16.mxu1 %v892_v21 }
 0x142   : > { %535 = vmatmul.mubr.bf16.vlgmr.msra.gmra.mrb[0].mxu1 %v496_v34 }
 0x143   : > { %766 = vmatprep.mubr.msk.bf16.mxu1 %vm893_vm2, %v892_v21 }
 0x215   : > { %v536_v2 = vpop.f32.mrb[0].mxu1 }
 0x216   : > { %v543_v8 = vpack.c.bf16 %v536_v2, %v536_v2  ;;  %v538_v27 = vpop.f32.mrb[1].mxu1 }
 0x217   : > { %v539_v39 = vpop.f32.mrb[2].mxu1 }
 0x218   : > { %v548_v43 = vsel %vm330_vm0, %v543_v8, 0  ;;  %v540_v22 = vpop.f32.mrb[3].mxu1 }
 0x219   : > { %765 = vmatpush3.bf16.msra.mxu1 %v548_v43 }
 0x21a   : > { %605 = vmatprep.subr.bf16.mxu1 %v592_v45 }
 0x21c   : > { %767 = vmatmul.mubr.msk.bf16.vlgmr.msra.gmra.mrb[4].mxu1 %vm314_vm1, %v542_v25 }
 0x21d   : > { %606 = vmatpush1.bf16.msra.mxu1 %v591_v50  ;;  %637 = vmatprep.mubr.bf16.mxu1 %v891_v0 }
 0x21e   : > { %607 = vmatprep.subr.bf16.mxu1 %v594_v28 }
 0x221   : > { %608 = vmatpush1.bf16.msra.mxu1 %v593_v17 }
 0x2ef   : > { %v584_v44 = vpop.f32.mrb[4].mxu1 }
 0x2f0   : > { %v590_v46 = vpack.c.bf16 %v584_v44, %v584_v44  ;;  %v768_v48 = vpop.f32.mrb[5].mxu1 }
 0x2f1   : > { %v587_v49 = vpop.f32.mrb[6].mxu1 }
 0x2f2   : > { %752 = vmatmul.mubr.msk.bf16.vlgmr.msra.gmra.mrb[8].mxu1 %vm601_vm3, %v590_v46  ;;  %v769_v51 = vpop.f32.mrb[7].mxu1 }
 0x3c5   : > { %v639_v54 = vpop.f32.mrb[8].mxu1 }
 0x3c6   : > { %v640_v56 = vadd.f32 %v639_v54, %v599_v52  ;;  %v641_v57 = vpop.f32.mrb[9].mxu1 }
 0x3c7   : > { %v642_v24 = vadd.f32 %v641_v57, %v599_v52  ;;  %v643_v58 = vpop.f32.mrb[10].mxu1 }
 0x3c8   : > { %v646_v0 = vmax.f32 %v640_v56, 0.0  ;;  %v644_v59 = vpop.f32.mrb[11].mxu1 }
 0x3c9   : > { %v647_v60 = vmax.f32 %v642_v24, 0.0 }
 0x3ca   : > { %v648_v61 = vadd.f32 %v646_v0, %v412_v62 }
 0x3cb   : > { %v649_v63 = vadd.f32 %v647_v60, %v1104_v55 }
 0x3cd   : > { %v760_v1 = vpack.c.bf16 %v649_v63, %v648_v61 }
 0x3cf   : > { %658 = vst [vmem:[%s217_s13] sm:$0xff] %v760_v1 }
 0x3d0   : > { %840 = shalt.err (!%p837_p3)
}
 0x3d1   : > { %s841_s6 = scalar_lea.hbm %s1134_s17, 128  ;;  %s845_s9 = scalar_lea.hbm %s1181_s5, 256 }
 0x3d2   : > { %p842_p4 = scmp.ne.s32.totalorder %s1134_s17, %s841_s6  ;;  %p846_p9 = scmp.lt.u32.totalorder %s1134_s17, %s1181_s5 }
 0x3d3   : > { %p847_p10 = scmp.lt.u32.totalorder %s845_s9, %s841_s6  ;;  %p849_p12 = scmp.lt.u32.totalorder %s841_s6, %s1134_s17 }
 0x3d4   : > { %p843_p7 = pnand %p842_p4, %p963_p5 }
 0x3d5   : > { %p848_p11 = por %p847_p10, %p846_p9 }
 0x3d6   : > { %p844_p8 = pneg %p843_p7 }
 0x3d7   : > { %p850_p13 = por %p849_p12, %p848_p11 }
 0x3d9   : > { %p851_p0 = pnand %p850_p13, %p844_p8 }
 0x3db   : > { %854 = shalt.err (!%p851_p0)
}
 0x3dc   : > { %770 = dma.vmem_to_hbm [thread:$0]  (%p963_p5), %s1136_s14, 128, %s1134_s17, %s660_s23  }
 0x3dd PF: > { %p776_p1 = scmp.ge.s32.totalorder %s889_s21, 2  ;;  %s686_s12 = sand.u32 1, %s877_s18  }
 0x3de   : > { %s687_s13 = scalar_lea.sflag [#allocation3], %s686_s12 }
 0x3df   : > { %p773_p2 = pnand %p776_p1, %p967_p6 }
 0x3e1   : > { %872 = dma.done.wait (!%p773_p2), %s687_s13, 128  }
 0x3e2   : > { %874 = vsyncadd (!%p773_p2), %s687_s13, 4294967168  ;;  %p15_p3 = scmp.ge.s32.totalorder %s950_s24, 4   ;;  %s1184_s18 = smov %s881_s19 }
 0x3e3   : > { %s1185_s19 = smov %s885_s20  ;;  %s1186_s20 = smov %s961_s27 }
 0x3e4   : > { %s1187_s21 = smov %s950_s24  ;;  %17 = sbr.rel (!%p15_p3) target bundleno = 3 (0x3), region = 75 }
 0x3eb   :  { %692 = vsyncpa [#allocation3], 1 }
 0x3ec   :  { %694 = vsyncpa [#allocation3 + $0x1], 1 }

</bundles_post_ra>
